<compile_context>
chip_gen: v6e
topology: v6e:2x2x1
jax: 0.10.0
libtpu: 0.0.40
codegen_flags: <defaults>
</compile_context>

<pallas_src>
import jax
import jax.numpy as jnp
from jax import lax
from jax.experimental import pallas as pl
from jax.experimental.pallas import tpu as pltpu


LANE_PAD = 128  # pad the Linear-head output dim to a full 128-lane width


def lstm_head_kernel(x_ref, w_ih_ref, w_hh_ref, b_ref, w_fc_ref, b_fc_ref,
                     out_ref, gx_ref):
    """Fused LSTM recurrence + Linear head, batch-major layout.

    x_ref    : (B, T, F)       batch-first input sequence (VMEM)
    w_ih_ref : (F, 4H)         input->gates weight, transposed, gate order [i, f, g, o],
                               g-gate columns pre-scaled by 2
    w_hh_ref : (H, 4H)         hidden->gates weight, transposed, g columns pre-scaled by 2
    b_ref    : (1, 4H)         bias_ih + bias_hh (row), g entries pre-scaled by 2
    w_fc_ref : (H, LANE_PAD)   Linear head weight, transposed + zero-padded to 128 lanes
    b_fc_ref : (1, LANE_PAD)   Linear head bias, zero-padded
    out_ref  : (B, LANE_PAD)   head(h_T); only [:, :label_window] is meaningful
    gx_ref   : (T, B, 4H)      VMEM scratch: per-step input projection (+ folded bias),
                               lane dim = 4H (lane-dense)
    """
    B, T, F = x_ref.shape
    H, H4 = w_hh_ref.shape

    w_ih_t = w_ih_ref[...]        # (F, 4H)
    w_hh_t = w_hh_ref[...]        # (H, 4H)  -- loop-invariant (stationary MXU RHS)
    bias = b_ref[...]             # (1, 4H)

    # ---- Prologue (off the serial chain): ONE lane-dense matmul for all T*B projections.
    # (B,T,F) -> (B*T,F) is a layout-preserving collapse of the leading dims.
    x_flat = x_ref[...].reshape(B * T, F)                              # row = b*T + t
    proj = lax.dot_general(x_flat, w_ih_t,
                           dimension_numbers=(((1,), (0,)), ((), ())),
                           preferred_element_type=jnp.float32) + bias  # (B*T, 4H)
    proj = proj.reshape(B, T, H4)
    # Re-lay-out to t-major scratch with static slices (T is tiny, prologue only), so the
    # per-step read inside the recurrence is a plain leading-axis index gx_ref[t].
    for t in range(T):                                                 # static Python loop
        gx_ref[t] = proj[:, t, :]                                      # (B, 4H) store

    # ---- Recurrence: batch-major, fully unrolled; only h @ W_hh^T on the serial chain.
    def step(t, carry):
        h, c = carry                                                   # (B, H) each
        gates = gx_ref[t] + jnp.dot(h, w_hh_t,                         # (B, 4H): 1 MXU op
                                    preferred_element_type=jnp.float32)
        s = jax.nn.sigmoid(gates)                 # ONE EUP pass over all 4 gates (1 vreg)
        i_g = s[:, 0 * H:1 * H]                   # static 32-lane extracts (XLU slot)
        f_g = s[:, 1 * H:2 * H]
        g_g = 2.0 * s[:, 2 * H:3 * H] - 1.0       # tanh(z) = 2*sigmoid(2z) - 1
        o_g = s[:, 3 * H:4 * H]
        c_new = f_g * c + i_g * g_g
        h_new = o_g * jnp.tanh(c_new)
        return h_new, c_new

    h0 = jnp.zeros((B, H), dtype=jnp.float32)
    c0 = jnp.zeros((B, H), dtype=jnp.float32)
    h_last, _ = lax.fori_loop(0, T, step, (h0, c0), unroll=True)

    # ---- Linear head: one MXU op + one 128-lane-dense full-block store.
    out_ref[...] = (jnp.dot(h_last, w_fc_ref[...],
                            preferred_element_type=jnp.float32) + b_fc_ref[...])


def lstm_model_forward(x_btf, kernel_params, label_window):
    """x_btf: (B, T, F) batch-first input (float32). Returns (B, label_window, 1)."""
    w_ih_t, w_hh_t, b_row, w_fc_pad, b_fc_pad = kernel_params
    B, T, F = x_btf.shape
    H = w_hh_t.shape[0]
    lpad = w_fc_pad.shape[1]

    x = x_btf.astype(jnp.float32)   # no-op for f32 input; no wrapper-side transpose launch

    vmem = pl.BlockSpec(memory_space=pltpu.MemorySpace.VMEM)
    # NOTE (v7x scale-up): at production batch sizes, switch to grid=(B // TB,) with
    # per-batch BlockSpecs on x/out, constant-index weight blocks, and
    # compiler_params=pltpu.CompilerParams(dimension_semantics=("parallel",)) so both
    # TensorCores are used; budget gx for 64 MiB VMEM (chunk over T or keep it in HBM
    # with pl.ANY + manual double-buffering).  At B=2 a single program is faster.
    out_pad = pl.pallas_call(
        lstm_head_kernel,
        out_shape=jax.ShapeDtypeStruct((B, lpad), jnp.float32),
        in_specs=[vmem, vmem, vmem, vmem, vmem, vmem],
        out_specs=vmem,
        scratch_shapes=[pltpu.VMEM((T, B, 4 * H), jnp.float32)],
    )(x, w_ih_t, w_hh_t, b_row, w_fc_pad, b_fc_pad)

    # x = seq(lstm_out)[:, -1, :].unsqueeze(2)  ->  (B, label_window, 1)
    return out_pad[:, :label_window, None]


def init_raw_params(key, feature_size, hidden_size, label_window):
    """PyTorch-shaped params (uniform +/- 1/sqrt(H)), gate order [i, f, g, o]."""
    H, F, L = hidden_size, feature_size, label_window
    k = 1.0 / jnp.sqrt(jnp.float32(H))
    keys = jax.random.split(key, 6)
    w_ih = jax.random.uniform(keys[0], (4 * H, F), jnp.float32, -k, k)
    w_hh = jax.random.uniform(keys[1], (4 * H, H), jnp.float32, -k, k)
    b_ih = jax.random.uniform(keys[2], (4 * H,), jnp.float32, -k, k)
    b_hh = jax.random.uniform(keys[3], (4 * H,), jnp.float32, -k, k)
    w_fc = jax.random.uniform(keys[4], (L, H), jnp.float32, -k, k)
    b_fc = jax.random.uniform(keys[5], (L,), jnp.float32, -k, k)
    return (w_ih, w_hh, b_ih, b_hh, w_fc, b_fc)


def pack_params_for_kernel(raw_params):
    """Host-side, one-time param prep: batch-major / lane-dense kernel layout."""
    w_ih, w_hh, b_ih, b_hh, w_fc, b_fc = raw_params
    H4 = w_ih.shape[0]
    H = H4 // 4
    L = w_fc.shape[0]
    g = slice(2 * H, 3 * H)

    # Pre-scale the g-gate rows of W_ih, W_hh AND the folded bias by 2 (consistently),
    # so a single sigmoid over the whole gate block suffices: tanh(z) = 2*sigmoid(2z)-1.
    w_ih_s = w_ih.at[g, :].multiply(2.0)                       # (4H, F)
    w_hh_s = w_hh.at[g, :].multiply(2.0)                       # (4H, H)
    b_s = (b_ih + b_hh).at[g].multiply(2.0)                    # (4H,), bias folded once

    # Batch-major kernel layout: weights transposed so 4H is on the lane axis.
    w_ih_t = jnp.asarray(w_ih_s.T, jnp.float32)                # (F, 4H)
    w_hh_t = jnp.asarray(w_hh_s.T, jnp.float32)                # (H, 4H)
    b_row = jnp.asarray(b_s[None, :], jnp.float32)             # (1, 4H)

    # Lane-dense head: transpose and zero-pad to 128 output lanes.
    w_fc_k = jnp.zeros((H, LANE_PAD), jnp.float32).at[:, :L].set(w_fc.T)
    b_fc_k = jnp.zeros((1, LANE_PAD), jnp.float32).at[0, :L].set(b_fc)
    return (w_ih_t, w_hh_t, b_row, w_fc_k, b_fc_k)


def lstm_model_reference(x, raw_params, label_window):
    """Pure-JAX textbook LSTM + Linear head (matches nn.LSTM/nn.Linear semantics, f32)."""
    w_ih, w_hh, b_ih, b_hh, w_fc, b_fc = raw_params
    B, T, F = x.shape
    H = w_hh.shape[1]
    h = jnp.zeros((B, H), jnp.float32)
    c = jnp.zeros((B, H), jnp.float32)
    b_all = b_ih + b_hh
    for t in range(T):
        z = x[:, t, :] @ w_ih.T + h @ w_hh.T + b_all
        i = jax.nn.sigmoid(z[:, 0 * H:1 * H])
        f = jax.nn.sigmoid(z[:, 1 * H:2 * H])
        g = jnp.tanh(z[:, 2 * H:3 * H])
        o = jax.nn.sigmoid(z[:, 3 * H:4 * H])
        c = f * c + i * g
        h = o * jnp.tanh(c)
    out = h @ w_fc.T + b_fc                                    # (B, L)
    return out[:, :, None]                                     # (B, L, 1)


if __name__ == "__main__":
    B, T, F = 2, 8, 5            # batch, input_window, feature_size
    H, L = 32, 5                 # hidden_size (4H = 128 lanes), label_window

    key = jax.random.PRNGKey(0)
    k_x, k_p = jax.random.split(key)
    x = jax.random.normal(k_x, (B, T, F), dtype=jnp.float32)

    raw_params = init_raw_params(k_p, F, H, L)
    kernel_params = pack_params_for_kernel(raw_params)

    y = lstm_model_forward(x, kernel_params, L)
    jax.block_until_ready(y)
    assert y.shape == (B, L, 1), y.shape

    y_ref = lstm_model_reference(x, raw_params, L)
    err = float(jnp.max(jnp.abs(y - y_ref)))
    assert jnp.allclose(y, y_ref, atol=1e-4, rtol=1e-3), f"max abs err = {err}"

    print("KERNEL_OK")
</pallas_src>

<mosaic_0001>
module attributes {stable_mosaic.version = 11 : i64} {
  func.func @lstm_head_kernel(%arg0: memref<2x8x5xf32, #tpu.memory_space<vmem>>, %arg1: memref<5x128xf32, #tpu.memory_space<vmem>>, %arg2: memref<32x128xf32, #tpu.memory_space<vmem>>, %arg3: memref<1x128xf32, #tpu.memory_space<vmem>>, %arg4: memref<32x128xf32, #tpu.memory_space<vmem>>, %arg5: memref<1x128xf32, #tpu.memory_space<vmem>>, %arg6: memref<2x128xf32, #tpu.memory_space<vmem>>, %arg7: memref<8x2x128xf32, #tpu.memory_space<vmem>>) attributes {dimension_semantics = [], scalar_prefetch = 0 : i64, scratch_operands = 1 : i64, tpu.core_type = #tpu.core_type<tc>} {
    %c0 = arith.constant 0 : index
    %c0_0 = arith.constant 0 : index
    %0 = vector.load %arg1[%c0, %c0_0] : memref<5x128xf32, #tpu.memory_space<vmem>>, vector<5x128xf32>
    %c0_1 = arith.constant 0 : index
    %c0_2 = arith.constant 0 : index
    %1 = vector.load %arg2[%c0_1, %c0_2] : memref<32x128xf32, #tpu.memory_space<vmem>>, vector<32x128xf32>
    %c0_3 = arith.constant 0 : index
    %c0_4 = arith.constant 0 : index
    %2 = vector.load %arg3[%c0_3, %c0_4] : memref<1x128xf32, #tpu.memory_space<vmem>>, vector<1x128xf32>
    %c0_5 = arith.constant 0 : index
    %c0_6 = arith.constant 0 : index
    %c0_7 = arith.constant 0 : index
    %3 = vector.load %arg0[%c0_5, %c0_6, %c0_7] : memref<2x8x5xf32, #tpu.memory_space<vmem>>, vector<2x8x5xf32>
    %4 = vector.shape_cast %3 : vector<2x8x5xf32> to vector<16x5xf32>
    %cst = arith.constant dense<0.000000e+00> : vector<16x128xf32>
    %5 = tpu.matmul %4, %0, %cst {dimension_numbers = #tpu.dot_dimension_numbers<[1], [0], [0], [1], [0, 0, 1, 1], [], []>} : vector<16x5xf32>, vector<5x128xf32>, vector<16x128xf32> -> vector<16x128xf32>
    %6 = vector.broadcast %2 : vector<1x128xf32> to vector<16x128xf32>
    %7 = arith.addf %5, %6 : vector<16x128xf32>
    %8 = vector.shape_cast %7 : vector<16x128xf32> to vector<2x8x128xf32>
    %9 = vector.extract_strided_slice %8 {offsets = [0, 0, 0], sizes = [2, 1, 128], strides = [1, 1, 1]} : vector<2x8x128xf32> to vector<2x1x128xf32>
    %10 = vector.shape_cast %9 : vector<2x1x128xf32> to vector<2x128xf32>
    %c0_8 = arith.constant 0 : index
    %c0_9 = arith.constant 0 : index
    %c0_10 = arith.constant 0 : index
    %11 = vector.load %arg7[%c0_8, %c0_9, %c0_10] : memref<8x2x128xf32, #tpu.memory_space<vmem>>, vector<1x2x128xf32>
    %12 = vector.shape_cast %11 : vector<1x2x128xf32> to vector<2x128xf32>
    %13 = vector.shape_cast %10 : vector<2x128xf32> to vector<1x2x128xf32>
    tpu.vector_store %arg7[%c0_8, %c0_9, %c0_10], %13 {strides = array<i32>} : memref<8x2x128xf32, #tpu.memory_space<vmem>>, vector<1x2x128xf32>,
    %14 = vector.extract_strided_slice %8 {offsets = [0, 1, 0], sizes = [2, 1, 128], strides = [1, 1, 1]} : vector<2x8x128xf32> to vector<2x1x128xf32>
    %15 = vector.shape_cast %14 : vector<2x1x128xf32> to vector<2x128xf32>
    %c1 = arith.constant 1 : index
    %c0_11 = arith.constant 0 : index
    %c0_12 = arith.constant 0 : index
    %16 = vector.load %arg7[%c1, %c0_11, %c0_12] : memref<8x2x128xf32, #tpu.memory_space<vmem>>, vector<1x2x128xf32>
    %17 = vector.shape_cast %16 : vector<1x2x128xf32> to vector<2x128xf32>
    %18 = vector.shape_cast %15 : vector<2x128xf32> to vector<1x2x128xf32>
    tpu.vector_store %arg7[%c1, %c0_11, %c0_12], %18 {strides = array<i32>} : memref<8x2x128xf32, #tpu.memory_space<vmem>>, vector<1x2x128xf32>,
    %19 = vector.extract_strided_slice %8 {offsets = [0, 2, 0], sizes = [2, 1, 128], strides = [1, 1, 1]} : vector<2x8x128xf32> to vector<2x1x128xf32>
    %20 = vector.shape_cast %19 : vector<2x1x128xf32> to vector<2x128xf32>
    %c2 = arith.constant 2 : index
    %c0_13 = arith.constant 0 : index
    %c0_14 = arith.constant 0 : index
    %21 = vector.load %arg7[%c2, %c0_13, %c0_14] : memref<8x2x128xf32, #tpu.memory_space<vmem>>, vector<1x2x128xf32>
    %22 = vector.shape_cast %21 : vector<1x2x128xf32> to vector<2x128xf32>
    %23 = vector.shape_cast %20 : vector<2x128xf32> to vector<1x2x128xf32>
    tpu.vector_store %arg7[%c2, %c0_13, %c0_14], %23 {strides = array<i32>} : memref<8x2x128xf32, #tpu.memory_space<vmem>>, vector<1x2x128xf32>,
    %24 = vector.extract_strided_slice %8 {offsets = [0, 3, 0], sizes = [2, 1, 128], strides = [1, 1, 1]} : vector<2x8x128xf32> to vector<2x1x128xf32>
    %25 = vector.shape_cast %24 : vector<2x1x128xf32> to vector<2x128xf32>
    %c3 = arith.constant 3 : index
    %c0_15 = arith.constant 0 : index
    %c0_16 = arith.constant 0 : index
    %26 = vector.load %arg7[%c3, %c0_15, %c0_16] : memref<8x2x128xf32, #tpu.memory_space<vmem>>, vector<1x2x128xf32>
    %27 = vector.shape_cast %26 : vector<1x2x128xf32> to vector<2x128xf32>
    %28 = vector.shape_cast %25 : vector<2x128xf32> to vector<1x2x128xf32>
    tpu.vector_store %arg7[%c3, %c0_15, %c0_16], %28 {strides = array<i32>} : memref<8x2x128xf32, #tpu.memory_space<vmem>>, vector<1x2x128xf32>,
    %29 = vector.extract_strided_slice %8 {offsets = [0, 4, 0], sizes = [2, 1, 128], strides = [1, 1, 1]} : vector<2x8x128xf32> to vector<2x1x128xf32>
    %30 = vector.shape_cast %29 : vector<2x1x128xf32> to vector<2x128xf32>
    %c4 = arith.constant 4 : index
    %c0_17 = arith.constant 0 : index
    %c0_18 = arith.constant 0 : index
    %31 = vector.load %arg7[%c4, %c0_17, %c0_18] : memref<8x2x128xf32, #tpu.memory_space<vmem>>, vector<1x2x128xf32>
    %32 = vector.shape_cast %31 : vector<1x2x128xf32> to vector<2x128xf32>
    %33 = vector.shape_cast %30 : vector<2x128xf32> to vector<1x2x128xf32>
    tpu.vector_store %arg7[%c4, %c0_17, %c0_18], %33 {strides = array<i32>} : memref<8x2x128xf32, #tpu.memory_space<vmem>>, vector<1x2x128xf32>,
    %34 = vector.extract_strided_slice %8 {offsets = [0, 5, 0], sizes = [2, 1, 128], strides = [1, 1, 1]} : vector<2x8x128xf32> to vector<2x1x128xf32>
    %35 = vector.shape_cast %34 : vector<2x1x128xf32> to vector<2x128xf32>
    %c5 = arith.constant 5 : index
    %c0_19 = arith.constant 0 : index
    %c0_20 = arith.constant 0 : index
    %36 = vector.load %arg7[%c5, %c0_19, %c0_20] : memref<8x2x128xf32, #tpu.memory_space<vmem>>, vector<1x2x128xf32>
    %37 = vector.shape_cast %36 : vector<1x2x128xf32> to vector<2x128xf32>
    %38 = vector.shape_cast %35 : vector<2x128xf32> to vector<1x2x128xf32>
    tpu.vector_store %arg7[%c5, %c0_19, %c0_20], %38 {strides = array<i32>} : memref<8x2x128xf32, #tpu.memory_space<vmem>>, vector<1x2x128xf32>,
    %39 = vector.extract_strided_slice %8 {offsets = [0, 6, 0], sizes = [2, 1, 128], strides = [1, 1, 1]} : vector<2x8x128xf32> to vector<2x1x128xf32>
    %40 = vector.shape_cast %39 : vector<2x1x128xf32> to vector<2x128xf32>
    %c6 = arith.constant 6 : index
    %c0_21 = arith.constant 0 : index
    %c0_22 = arith.constant 0 : index
    %41 = vector.load %arg7[%c6, %c0_21, %c0_22] : memref<8x2x128xf32, #tpu.memory_space<vmem>>, vector<1x2x128xf32>
    %42 = vector.shape_cast %41 : vector<1x2x128xf32> to vector<2x128xf32>
    %43 = vector.shape_cast %40 : vector<2x128xf32> to vector<1x2x128xf32>
    tpu.vector_store %arg7[%c6, %c0_21, %c0_22], %43 {strides = array<i32>} : memref<8x2x128xf32, #tpu.memory_space<vmem>>, vector<1x2x128xf32>,
    %44 = vector.extract_strided_slice %8 {offsets = [0, 7, 0], sizes = [2, 1, 128], strides = [1, 1, 1]} : vector<2x8x128xf32> to vector<2x1x128xf32>
    %45 = vector.shape_cast %44 : vector<2x1x128xf32> to vector<2x128xf32>
    %c7 = arith.constant 7 : index
    %c0_23 = arith.constant 0 : index
    %c0_24 = arith.constant 0 : index
    %46 = vector.load %arg7[%c7, %c0_23, %c0_24] : memref<8x2x128xf32, #tpu.memory_space<vmem>>, vector<1x2x128xf32>
    %47 = vector.shape_cast %46 : vector<1x2x128xf32> to vector<2x128xf32>
    %48 = vector.shape_cast %45 : vector<2x128xf32> to vector<1x2x128xf32>
    tpu.vector_store %arg7[%c7, %c0_23, %c0_24], %48 {strides = array<i32>} : memref<8x2x128xf32, #tpu.memory_space<vmem>>, vector<1x2x128xf32>,
    %cst_25 = arith.constant 0.000000e+00 : f32
    %49 = vector.broadcast %cst_25 : f32 to vector<2x32xf32>
    %cst_26 = arith.constant 0.000000e+00 : f32
    %50 = vector.broadcast %cst_26 : f32 to vector<2x32xf32>
    %c0_i32 = arith.constant 0 : i32
    %51 = arith.index_cast %c0_i32 : i32 to index
    %c0_27 = arith.constant 0 : index
    %c0_28 = arith.constant 0 : index
    %52 = vector.load %arg7[%51, %c0_27, %c0_28] : memref<8x2x128xf32, #tpu.memory_space<vmem>>, vector<1x2x128xf32>
    %53 = vector.shape_cast %52 : vector<1x2x128xf32> to vector<2x128xf32>
    %cst_29 = arith.constant dense<0.000000e+00> : vector<2x128xf32>
    %54 = tpu.matmul %49, %1, %cst_29 {dimension_numbers = #tpu.dot_dimension_numbers<[1], [0], [0], [1], [0, 0, 1, 1], [], []>} : vector<2x32xf32>, vector<32x128xf32>, vector<2x128xf32> -> vector<2x128xf32>
    %55 = arith.addf %53, %54 : vector<2x128xf32>
    %56 = arith.negf %55 : vector<2x128xf32>
    %57 = math.exp %56 : vector<2x128xf32>
    %cst_30 = arith.constant 1.000000e+00 : f32
    %58 = vector.broadcast %cst_30 : f32 to vector<2x128xf32>
    %59 = arith.addf %58, %57 : vector<2x128xf32>
    %60 = arith.divf %58, %59 : vector<2x128xf32>
    %61 = vector.extract_strided_slice %60 {offsets = [0, 0], sizes = [2, 32], strides = [1, 1]} : vector<2x128xf32> to vector<2x32xf32>
    %62 = vector.extract_strided_slice %60 {offsets = [0, 32], sizes = [2, 32], strides = [1, 1]} : vector<2x128xf32> to vector<2x32xf32>
    %63 = vector.extract_strided_slice %60 {offsets = [0, 64], sizes = [2, 32], strides = [1, 1]} : vector<2x128xf32> to vector<2x32xf32>
    %cst_31 = arith.constant 2.000000e+00 : f32
    %64 = vector.broadcast %cst_31 : f32 to vector<2x32xf32>
    %65 = arith.mulf %64, %63 : vector<2x32xf32>
    %cst_32 = arith.constant 1.000000e+00 : f32
    %66 = vector.broadcast %cst_32 : f32 to vector<2x32xf32>
    %67 = arith.subf %65, %66 : vector<2x32xf32>
    %68 = vector.extract_strided_slice %60 {offsets = [0, 96], sizes = [2, 32], strides = [1, 1]} : vector<2x128xf32> to vector<2x32xf32>
    %69 = arith.mulf %62, %50 : vector<2x32xf32>
    %70 = arith.mulf %61, %67 : vector<2x32xf32>
    %71 = arith.addf %69, %70 : vector<2x32xf32>
    %72 = math.tanh %71 : vector<2x32xf32>
    %73 = arith.mulf %68, %72 : vector<2x32xf32>
    %c1_i32 = arith.constant 1 : i32
    %74 = arith.index_cast %c1_i32 : i32 to index
    %c0_33 = arith.constant 0 : index
    %c0_34 = arith.constant 0 : index
    %75 = vector.load %arg7[%74, %c0_33, %c0_34] : memref<8x2x128xf32, #tpu.memory_space<vmem>>, vector<1x2x128xf32>
    %76 = vector.shape_cast %75 : vector<1x2x128xf32> to vector<2x128xf32>
    %cst_35 = arith.constant dense<0.000000e+00> : vector<2x128xf32>
    %77 = tpu.matmul %73, %1, %cst_35 {dimension_numbers = #tpu.dot_dimension_numbers<[1], [0], [0], [1], [0, 0, 1, 1], [], []>} : vector<2x32xf32>, vector<32x128xf32>, vector<2x128xf32> -> vector<2x128xf32>
    %78 = arith.addf %76, %77 : vector<2x128xf32>
    %79 = arith.negf %78 : vector<2x128xf32>
    %80 = math.exp %79 : vector<2x128xf32>
    %cst_36 = arith.constant 1.000000e+00 : f32
    %81 = vector.broadcast %cst_36 : f32 to vector<2x128xf32>
    %82 = arith.addf %81, %80 : vector<2x128xf32>
    %83 = arith.divf %81, %82 : vector<2x128xf32>
    %84 = vector.extract_strided_slice %83 {offsets = [0, 0], sizes = [2, 32], strides = [1, 1]} : vector<2x128xf32> to vector<2x32xf32>
    %85 = vector.extract_strided_slice %83 {offsets = [0, 32], sizes = [2, 32], strides = [1, 1]} : vector<2x128xf32> to vector<2x32xf32>
    %86 = vector.extract_strided_slice %83 {offsets = [0, 64], sizes = [2, 32], strides = [1, 1]} : vector<2x128xf32> to vector<2x32xf32>
    %cst_37 = arith.constant 2.000000e+00 : f32
    %87 = vector.broadcast %cst_37 : f32 to vector<2x32xf32>
    %88 = arith.mulf %87, %86 : vector<2x32xf32>
    %cst_38 = arith.constant 1.000000e+00 : f32
    %89 = vector.broadcast %cst_38 : f32 to vector<2x32xf32>
    %90 = arith.subf %88, %89 : vector<2x32xf32>
    %91 = vector.extract_strided_slice %83 {offsets = [0, 96], sizes = [2, 32], strides = [1, 1]} : vector<2x128xf32> to vector<2x32xf32>
    %92 = arith.mulf %85, %71 : vector<2x32xf32>
    %93 = arith.mulf %84, %90 : vector<2x32xf32>
    %94 = arith.addf %92, %93 : vector<2x32xf32>
    %95 = math.tanh %94 : vector<2x32xf32>
    %96 = arith.mulf %91, %95 : vector<2x32xf32>
    %c2_i32 = arith.constant 2 : i32
    %97 = arith.index_cast %c2_i32 : i32 to index
    %c0_39 = arith.constant 0 : index
    %c0_40 = arith.constant 0 : index
    %98 = vector.load %arg7[%97, %c0_39, %c0_40] : memref<8x2x128xf32, #tpu.memory_space<vmem>>, vector<1x2x128xf32>
    %99 = vector.shape_cast %98 : vector<1x2x128xf32> to vector<2x128xf32>
    %cst_41 = arith.constant dense<0.000000e+00> : vector<2x128xf32>
    %100 = tpu.matmul %96, %1, %cst_41 {dimension_numbers = #tpu.dot_dimension_numbers<[1], [0], [0], [1], [0, 0, 1, 1], [], []>} : vector<2x32xf32>, vector<32x128xf32>, vector<2x128xf32> -> vector<2x128xf32>
    %101 = arith.addf %99, %100 : vector<2x128xf32>
    %102 = arith.negf %101 : vector<2x128xf32>
    %103 = math.exp %102 : vector<2x128xf32>
    %cst_42 = arith.constant 1.000000e+00 : f32
    %104 = vector.broadcast %cst_42 : f32 to vector<2x128xf32>
    %105 = arith.addf %104, %103 : vector<2x128xf32>
    %106 = arith.divf %104, %105 : vector<2x128xf32>
    %107 = vector.extract_strided_slice %106 {offsets = [0, 0], sizes = [2, 32], strides = [1, 1]} : vector<2x128xf32> to vector<2x32xf32>
    %108 = vector.extract_strided_slice %106 {offsets = [0, 32], sizes = [2, 32], strides = [1, 1]} : vector<2x128xf32> to vector<2x32xf32>
    %109 = vector.extract_strided_slice %106 {offsets = [0, 64], sizes = [2, 32], strides = [1, 1]} : vector<2x128xf32> to vector<2x32xf32>
    %cst_43 = arith.constant 2.000000e+00 : f32
    %110 = vector.broadcast %cst_43 : f32 to vector<2x32xf32>
    %111 = arith.mulf %110, %109 : vector<2x32xf32>
    %cst_44 = arith.constant 1.000000e+00 : f32
    %112 = vector.broadcast %cst_44 : f32 to vector<2x32xf32>
    %113 = arith.subf %111, %112 : vector<2x32xf32>
    %114 = vector.extract_strided_slice %106 {offsets = [0, 96], sizes = [2, 32], strides = [1, 1]} : vector<2x128xf32> to vector<2x32xf32>
    %115 = arith.mulf %108, %94 : vector<2x32xf32>
    %116 = arith.mulf %107, %113 : vector<2x32xf32>
    %117 = arith.addf %115, %116 : vector<2x32xf32>
    %118 = math.tanh %117 : vector<2x32xf32>
    %119 = arith.mulf %114, %118 : vector<2x32xf32>
    %c3_i32 = arith.constant 3 : i32
    %120 = arith.index_cast %c3_i32 : i32 to index
    %c0_45 = arith.constant 0 : index
    %c0_46 = arith.constant 0 : index
    %121 = vector.load %arg7[%120, %c0_45, %c0_46] : memref<8x2x128xf32, #tpu.memory_space<vmem>>, vector<1x2x128xf32>
    %122 = vector.shape_cast %121 : vector<1x2x128xf32> to vector<2x128xf32>
    %cst_47 = arith.constant dense<0.000000e+00> : vector<2x128xf32>
    %123 = tpu.matmul %119, %1, %cst_47 {dimension_numbers = #tpu.dot_dimension_numbers<[1], [0], [0], [1], [0, 0, 1, 1], [], []>} : vector<2x32xf32>, vector<32x128xf32>, vector<2x128xf32> -> vector<2x128xf32>
    %124 = arith.addf %122, %123 : vector<2x128xf32>
    %125 = arith.negf %124 : vector<2x128xf32>
    %126 = math.exp %125 : vector<2x128xf32>
    %cst_48 = arith.constant 1.000000e+00 : f32
    %127 = vector.broadcast %cst_48 : f32 to vector<2x128xf32>
    %128 = arith.addf %127, %126 : vector<2x128xf32>
    %129 = arith.divf %127, %128 : vector<2x128xf32>
    %130 = vector.extract_strided_slice %129 {offsets = [0, 0], sizes = [2, 32], strides = [1, 1]} : vector<2x128xf32> to vector<2x32xf32>
    %131 = vector.extract_strided_slice %129 {offsets = [0, 32], sizes = [2, 32], strides = [1, 1]} : vector<2x128xf32> to vector<2x32xf32>
    %132 = vector.extract_strided_slice %129 {offsets = [0, 64], sizes = [2, 32], strides = [1, 1]} : vector<2x128xf32> to vector<2x32xf32>
    %cst_49 = arith.constant 2.000000e+00 : f32
    %133 = vector.broadcast %cst_49 : f32 to vector<2x32xf32>
    %134 = arith.mulf %133, %132 : vector<2x32xf32>
    %cst_50 = arith.constant 1.000000e+00 : f32
    %135 = vector.broadcast %cst_50 : f32 to vector<2x32xf32>
    %136 = arith.subf %134, %135 : vector<2x32xf32>
    %137 = vector.extract_strided_slice %129 {offsets = [0, 96], sizes = [2, 32], strides = [1, 1]} : vector<2x128xf32> to vector<2x32xf32>
    %138 = arith.mulf %131, %117 : vector<2x32xf32>
    %139 = arith.mulf %130, %136 : vector<2x32xf32>
    %140 = arith.addf %138, %139 : vector<2x32xf32>
    %141 = math.tanh %140 : vector<2x32xf32>
    %142 = arith.mulf %137, %141 : vector<2x32xf32>
    %c4_i32 = arith.constant 4 : i32
    %143 = arith.index_cast %c4_i32 : i32 to index
    %c0_51 = arith.constant 0 : index
    %c0_52 = arith.constant 0 : index
    %144 = vector.load %arg7[%143, %c0_51, %c0_52] : memref<8x2x128xf32, #tpu.memory_space<vmem>>, vector<1x2x128xf32>
    %145 = vector.shape_cast %144 : vector<1x2x128xf32> to vector<2x128xf32>
    %cst_53 = arith.constant dense<0.000000e+00> : vector<2x128xf32>
    %146 = tpu.matmul %142, %1, %cst_53 {dimension_numbers = #tpu.dot_dimension_numbers<[1], [0], [0], [1], [0, 0, 1, 1], [], []>} : vector<2x32xf32>, vector<32x128xf32>, vector<2x128xf32> -> vector<2x128xf32>
    %147 = arith.addf %145, %146 : vector<2x128xf32>
    %148 = arith.negf %147 : vector<2x128xf32>
    %149 = math.exp %148 : vector<2x128xf32>
    %cst_54 = arith.constant 1.000000e+00 : f32
    %150 = vector.broadcast %cst_54 : f32 to vector<2x128xf32>
    %151 = arith.addf %150, %149 : vector<2x128xf32>
    %152 = arith.divf %150, %151 : vector<2x128xf32>
    %153 = vector.extract_strided_slice %152 {offsets = [0, 0], sizes = [2, 32], strides = [1, 1]} : vector<2x128xf32> to vector<2x32xf32>
    %154 = vector.extract_strided_slice %152 {offsets = [0, 32], sizes = [2, 32], strides = [1, 1]} : vector<2x128xf32> to vector<2x32xf32>
    %155 = vector.extract_strided_slice %152 {offsets = [0, 64], sizes = [2, 32], strides = [1, 1]} : vector<2x128xf32> to vector<2x32xf32>
    %cst_55 = arith.constant 2.000000e+00 : f32
    %156 = vector.broadcast %cst_55 : f32 to vector<2x32xf32>
    %157 = arith.mulf %156, %155 : vector<2x32xf32>
    %cst_56 = arith.constant 1.000000e+00 : f32
    %158 = vector.broadcast %cst_56 : f32 to vector<2x32xf32>
    %159 = arith.subf %157, %158 : vector<2x32xf32>
    %160 = vector.extract_strided_slice %152 {offsets = [0, 96], sizes = [2, 32], strides = [1, 1]} : vector<2x128xf32> to vector<2x32xf32>
    %161 = arith.mulf %154, %140 : vector<2x32xf32>
    %162 = arith.mulf %153, %159 : vector<2x32xf32>
    %163 = arith.addf %161, %162 : vector<2x32xf32>
    %164 = math.tanh %163 : vector<2x32xf32>
    %165 = arith.mulf %160, %164 : vector<2x32xf32>
    %c5_i32 = arith.constant 5 : i32
    %166 = arith.index_cast %c5_i32 : i32 to index
    %c0_57 = arith.constant 0 : index
    %c0_58 = arith.constant 0 : index
    %167 = vector.load %arg7[%166, %c0_57, %c0_58] : memref<8x2x128xf32, #tpu.memory_space<vmem>>, vector<1x2x128xf32>
    %168 = vector.shape_cast %167 : vector<1x2x128xf32> to vector<2x128xf32>
    %cst_59 = arith.constant dense<0.000000e+00> : vector<2x128xf32>
    %169 = tpu.matmul %165, %1, %cst_59 {dimension_numbers = #tpu.dot_dimension_numbers<[1], [0], [0], [1], [0, 0, 1, 1], [], []>} : vector<2x32xf32>, vector<32x128xf32>, vector<2x128xf32> -> vector<2x128xf32>
    %170 = arith.addf %168, %169 : vector<2x128xf32>
    %171 = arith.negf %170 : vector<2x128xf32>
    %172 = math.exp %171 : vector<2x128xf32>
    %cst_60 = arith.constant 1.000000e+00 : f32
    %173 = vector.broadcast %cst_60 : f32 to vector<2x128xf32>
    %174 = arith.addf %173, %172 : vector<2x128xf32>
    %175 = arith.divf %173, %174 : vector<2x128xf32>
    %176 = vector.extract_strided_slice %175 {offsets = [0, 0], sizes = [2, 32], strides = [1, 1]} : vector<2x128xf32> to vector<2x32xf32>
    %177 = vector.extract_strided_slice %175 {offsets = [0, 32], sizes = [2, 32], strides = [1, 1]} : vector<2x128xf32> to vector<2x32xf32>
    %178 = vector.extract_strided_slice %175 {offsets = [0, 64], sizes = [2, 32], strides = [1, 1]} : vector<2x128xf32> to vector<2x32xf32>
    %cst_61 = arith.constant 2.000000e+00 : f32
    %179 = vector.broadcast %cst_61 : f32 to vector<2x32xf32>
    %180 = arith.mulf %179, %178 : vector<2x32xf32>
    %cst_62 = arith.constant 1.000000e+00 : f32
    %181 = vector.broadcast %cst_62 : f32 to vector<2x32xf32>
    %182 = arith.subf %180, %181 : vector<2x32xf32>
    %183 = vector.extract_strided_slice %175 {offsets = [0, 96], sizes = [2, 32], strides = [1, 1]} : vector<2x128xf32> to vector<2x32xf32>
    %184 = arith.mulf %177, %163 : vector<2x32xf32>
    %185 = arith.mulf %176, %182 : vector<2x32xf32>
    %186 = arith.addf %184, %185 : vector<2x32xf32>
    %187 = math.tanh %186 : vector<2x32xf32>
    %188 = arith.mulf %183, %187 : vector<2x32xf32>
    %c6_i32 = arith.constant 6 : i32
    %189 = arith.index_cast %c6_i32 : i32 to index
    %c0_63 = arith.constant 0 : index
    %c0_64 = arith.constant 0 : index
    %190 = vector.load %arg7[%189, %c0_63, %c0_64] : memref<8x2x128xf32, #tpu.memory_space<vmem>>, vector<1x2x128xf32>
    %191 = vector.shape_cast %190 : vector<1x2x128xf32> to vector<2x128xf32>
    %cst_65 = arith.constant dense<0.000000e+00> : vector<2x128xf32>
    %192 = tpu.matmul %188, %1, %cst_65 {dimension_numbers = #tpu.dot_dimension_numbers<[1], [0], [0], [1], [0, 0, 1, 1], [], []>} : vector<2x32xf32>, vector<32x128xf32>, vector<2x128xf32> -> vector<2x128xf32>
    %193 = arith.addf %191, %192 : vector<2x128xf32>
    %194 = arith.negf %193 : vector<2x128xf32>
    %195 = math.exp %194 : vector<2x128xf32>
    %cst_66 = arith.constant 1.000000e+00 : f32
    %196 = vector.broadcast %cst_66 : f32 to vector<2x128xf32>
    %197 = arith.addf %196, %195 : vector<2x128xf32>
    %198 = arith.divf %196, %197 : vector<2x128xf32>
    %199 = vector.extract_strided_slice %198 {offsets = [0, 0], sizes = [2, 32], strides = [1, 1]} : vector<2x128xf32> to vector<2x32xf32>
    %200 = vector.extract_strided_slice %198 {offsets = [0, 32], sizes = [2, 32], strides = [1, 1]} : vector<2x128xf32> to vector<2x32xf32>
    %201 = vector.extract_strided_slice %198 {offsets = [0, 64], sizes = [2, 32], strides = [1, 1]} : vector<2x128xf32> to vector<2x32xf32>
    %cst_67 = arith.constant 2.000000e+00 : f32
    %202 = vector.broadcast %cst_67 : f32 to vector<2x32xf32>
    %203 = arith.mulf %202, %201 : vector<2x32xf32>
    %cst_68 = arith.constant 1.000000e+00 : f32
    %204 = vector.broadcast %cst_68 : f32 to vector<2x32xf32>
    %205 = arith.subf %203, %204 : vector<2x32xf32>
    %206 = vector.extract_strided_slice %198 {offsets = [0, 96], sizes = [2, 32], strides = [1, 1]} : vector<2x128xf32> to vector<2x32xf32>
    %207 = arith.mulf %200, %186 : vector<2x32xf32>
    %208 = arith.mulf %199, %205 : vector<2x32xf32>
    %209 = arith.addf %207, %208 : vector<2x32xf32>
    %210 = math.tanh %209 : vector<2x32xf32>
    %211 = arith.mulf %206, %210 : vector<2x32xf32>
    %c7_i32 = arith.constant 7 : i32
    %212 = arith.index_cast %c7_i32 : i32 to index
    %c0_69 = arith.constant 0 : index
    %c0_70 = arith.constant 0 : index
    %213 = vector.load %arg7[%212, %c0_69, %c0_70] : memref<8x2x128xf32, #tpu.memory_space<vmem>>, vector<1x2x128xf32>
    %214 = vector.shape_cast %213 : vector<1x2x128xf32> to vector<2x128xf32>
    %cst_71 = arith.constant dense<0.000000e+00> : vector<2x128xf32>
    %215 = tpu.matmul %211, %1, %cst_71 {dimension_numbers = #tpu.dot_dimension_numbers<[1], [0], [0], [1], [0, 0, 1, 1], [], []>} : vector<2x32xf32>, vector<32x128xf32>, vector<2x128xf32> -> vector<2x128xf32>
    %216 = arith.addf %214, %215 : vector<2x128xf32>
    %217 = arith.negf %216 : vector<2x128xf32>
    %218 = math.exp %217 : vector<2x128xf32>
    %cst_72 = arith.constant 1.000000e+00 : f32
    %219 = vector.broadcast %cst_72 : f32 to vector<2x128xf32>
    %220 = arith.addf %219, %218 : vector<2x128xf32>
    %221 = arith.divf %219, %220 : vector<2x128xf32>
    %222 = vector.extract_strided_slice %221 {offsets = [0, 0], sizes = [2, 32], strides = [1, 1]} : vector<2x128xf32> to vector<2x32xf32>
    %223 = vector.extract_strided_slice %221 {offsets = [0, 32], sizes = [2, 32], strides = [1, 1]} : vector<2x128xf32> to vector<2x32xf32>
    %224 = vector.extract_strided_slice %221 {offsets = [0, 64], sizes = [2, 32], strides = [1, 1]} : vector<2x128xf32> to vector<2x32xf32>
    %cst_73 = arith.constant 2.000000e+00 : f32
    %225 = vector.broadcast %cst_73 : f32 to vector<2x32xf32>
    %226 = arith.mulf %225, %224 : vector<2x32xf32>
    %cst_74 = arith.constant 1.000000e+00 : f32
    %227 = vector.broadcast %cst_74 : f32 to vector<2x32xf32>
    %228 = arith.subf %226, %227 : vector<2x32xf32>
    %229 = vector.extract_strided_slice %221 {offsets = [0, 96], sizes = [2, 32], strides = [1, 1]} : vector<2x128xf32> to vector<2x32xf32>
    %230 = arith.mulf %223, %209 : vector<2x32xf32>
    %231 = arith.mulf %222, %228 : vector<2x32xf32>
    %232 = arith.addf %230, %231 : vector<2x32xf32>
    %233 = math.tanh %232 : vector<2x32xf32>
    %234 = arith.mulf %229, %233 : vector<2x32xf32>
    %c8_i32 = arith.constant 8 : i32
    %c0_75 = arith.constant 0 : index
    %c0_76 = arith.constant 0 : index
    %235 = vector.load %arg4[%c0_75, %c0_76] : memref<32x128xf32, #tpu.memory_space<vmem>>, vector<32x128xf32>
    %cst_77 = arith.constant dense<0.000000e+00> : vector<2x128xf32>
    %236 = tpu.matmul %234, %235, %cst_77 {dimension_numbers = #tpu.dot_dimension_numbers<[1], [0], [0], [1], [0, 0, 1, 1], [], []>} : vector<2x32xf32>, vector<32x128xf32>, vector<2x128xf32> -> vector<2x128xf32>
    %c0_78 = arith.constant 0 : index
    %c0_79 = arith.constant 0 : index
    %237 = vector.load %arg5[%c0_78, %c0_79] : memref<1x128xf32, #tpu.memory_space<vmem>>, vector<1x128xf32>
    %238 = vector.broadcast %237 : vector<1x128xf32> to vector<2x128xf32>
    %239 = arith.addf %236, %238 : vector<2x128xf32>
    %c0_80 = arith.constant 0 : index
    %c0_81 = arith.constant 0 : index
    %240 = vector.load %arg6[%c0_80, %c0_81] : memref<2x128xf32, #tpu.memory_space<vmem>>, vector<2x128xf32>
    tpu.vector_store %arg6[%c0_80, %c0_81], %239 {strides = array<i32>} : memref<2x128xf32, #tpu.memory_space<vmem>>, vector<2x128xf32>,
    return
  }
}

</mosaic_0001>

<bundles_post_ra>
// kernel: tpu_custom_call.1
= control target key start
LH: loop header
LB: loop body
LE: loop exit
PB: predicated region body
PF: predicated region fallthrough
CT: control target
= control target key end

     0   :  { %11 = vsyncpa [#allocation4], 0  ;;  %s1626_s0 = inlined_call_operand.vmem [shape: f32[2,8,5], index: 0, kind: input, shape index: {}]   ;;  %s1627_s1 = inlined_call_operand.hbm [shape: f32[5,128], index: 1, kind: input, shape index: {}]   ;;  %s1628_s2 = inlined_call_operand.hbm [shape: f32[32,128], index: 2, kind: input, shape index: {}]   ;;  %s1629_s3 = inlined_call_operand.vmem [shape: f32[1,128], index: 3, kind: input, shape index: {}]   ;;  %s1630_s4 = inlined_call_operand.vmem [shape: f32[32,128], index: 4, kind: input, shape index: {}]   ;;  %s1631_s5 = inlined_call_operand.vmem [shape: f32[1,128], index: 5, kind: input, shape index: {}]   ;;  %s1632_s6 = inlined_call_operand.hbm [shape: f32[2,128], index: 6, kind: output, shape index: {}]  }
   0x1   :  { %12 = vsyncpa [#allocation7], 0 }
   0x2   :  { %13 = vsyncpa [#allocation5], 0  ;;  %s1414_s21 = smov [#allocation3]   ;;  %s1415_s23 = smov [#allocation6]  }
   0x3   :  { %s22_s22 = sshll.u32 %s1414_s21, 4  ;;  %s31_s24 = sshll.u32 %s1415_s23, 4  ;;  %s23_s22 = int_to_ptr.vmem [resolvable:$true] %s22_s22  ;;  %s32_s24 = int_to_ptr.vmem [resolvable:$true] %s31_s24 }
   0x4   :  { %s1356_s25 = scalar_lea.vmem %s23_s22, 128  ;;  %p1361_p1 = scmp.lt.s32.totalorder %s23_s22, %s23_s22 }
   0x5   :  { %p1357_p0 = scmp.ne.s32.totalorder %s23_s22, %s1356_s25  ;;  %p1362_p2 = scmp.lt.s32.totalorder %s1356_s25, %s1356_s25 }
   0x7   :  { %p1363_p3 = por %p1362_p2, %p1361_p1 }
   0x9   :  { %p1364_p4 = pnand %p1363_p3, %p1357_p0 }
   0xb   :  { %1367 = shalt.err (!%p1364_p4)
}
   0xc   :  { %25 = dma.hbm_to_vmem [thread:$0]  %s1627_s1, 128, %s23_s22, [#allocation4]  }
   0xd   :  { %s1376_s28 = scalar_lea.vmem %s32_s24, 512  ;;  %p1381_p6 = scmp.lt.s32.totalorder %s32_s24, %s32_s24 }
   0xe   :  { %p1377_p5 = scmp.ne.s32.totalorder %s32_s24, %s1376_s28  ;;  %p1382_p7 = scmp.lt.s32.totalorder %s1376_s28, %s1376_s28 }
  0x10   :  { %p1383_p8 = por %p1382_p7, %p1381_p6 }
  0x12   :  { %p1384_p9 = pnand %p1383_p8, %p1377_p5 }
  0x14   :  { %1387 = shalt.err (!%p1384_p9)
}
  0x15   :  { %s1416_s29 = smov 128   ;;  %s1417_s30 = smov 8  }
  0x16   :  { %37 = dma.hbm_to_vmem [thread:$0]  %s1628_s2, 512, %s32_s24, [#allocation7], %s1416_s29, %s1416_s29, %s1417_s30  }
  0x17   :  { %1408 = dma.done.wait [#allocation4], 128  }
  0x18   :  { %1409 = vsyncadd [#allocation4], 4294967168 }
  0x19   :  { %1410 = dma.done.wait [#allocation7], 512  }
  0x1a   :  { %1411 = vsyncadd [#allocation7], 4294966784  ;;  %v1418_v0 = vmov 0.0   ;;  %vm1419_vm0 = vmmov 0   ;;  %vm71_vm1 = vcmask 1044480   ;;  %vm64_vm2 = vcmask 39936  }
  0x1b   :  { %1192 = vmatprep.subr.mxu1 %v1418_v0  ;;  %1200 = vmatprep.mubr.msk.f32.mxu1 %vm1419_vm0, %v1418_v0  ;;  %v50_v1 = vld [vmem:[#allocation3] sm:$0x1f]  ;;  %v56_v2 = vld [vmem:[%s1626_s0] sm:$0xff]  ;;  %v57_v3 = vld [vmem:[%s1626_s0 + $0x8] sm:$0xff]  ;;  %vm153_vm3 = vcmask 1041409   ;;  %vm157_vm4 = vcmask 1042434  }
  0x1c   :  { %1187 = vmatprep.subr.msk.mxu0 %vm71_vm1, %v50_v1  ;;  %1189 = vmatprep.mubr.msk.f32.mxu0 %vm64_vm2, %v56_v2  ;;  %v1473_v4 = vld [vmem:[#allocation6 + $0x18] sm:$0xff]  ;;  %v1475_v5 = vld [vmem:[#allocation6 + $0x10] sm:$0xff]  ;;  %v1479_v6 = vld [vmem:[#allocation6 + $0x8] sm:$0xff]  ;;  %vm162_vm5 = vcmask 1043459   ;;  %vm167_vm6 = vcmask 1044484   ;;  %vm172_vm7 = vcmask 1045509  }
  0x1d   :  { %1188 = vmatpush3.msk.msra.mxu0 %vm71_vm1, %v50_v1  ;;  %1193 = vmatpush3.msra.mxu1 %v1473_v4  ;;  %v1484_v7 = vld [vmem:[#allocation6] sm:$0xff]  ;;  %v1110_v8 = vld [vmem:[%s1629_s3] ss:$0 sm:$0xff]  ;;  %vm177_vm8 = vcmask 1046534   ;;  %vm182_vm9 = vcmask 1047559   ;;  %s1420_s3 = smov 64  }
  0x1e   :  { %1190 = vmatmul.mubr.msk.f32.vlgmr.msra.gmra.mxu0 %vm64_vm2, %v57_v3  ;;  %1194 = vmatprep.subr.mxu1 %v1418_v0  ;;  %s1421_s12 = smov 32   ;;  %vm193_vm10 = vcmask 261120   ;;  %s1422_s23 = smov [#allocation8]  }
  0x1f   :  { %1195 = vmatpush3.msra.mxu1 %v1475_v5  ;;  %1203 = vmatprep.subr.mxu0 %v1418_v0 }
  0x20   :  { %1196 = vmatprep.subr.mxu1 %v1418_v0  ;;  %1204 = vmatpush3.msra.mxu0 %v1473_v4 }
  0x21   :  { %1197 = vmatpush3.msra.mxu1 %v1479_v6  ;;  %1205 = vmatprep.subr.mxu0 %v1418_v0 }
  0x22   :  { %1198 = vmatprep.subr.mxu1 %v1418_v0  ;;  %1206 = vmatpush3.msra.mxu0 %v1475_v5 }
  0x23   :  { %1199 = vmatpush3.msra.mxu1 %v1484_v7  ;;  %1207 = vmatprep.subr.mxu0 %v1418_v0 }
  0x24   :  { %1201 = vmatmul.mubr.f32.vlgmr.msra.gmra.mxu1 %v1418_v0  ;;  %1208 = vmatpush3.msra.mxu0 %v1479_v6 }
  0x25   :  { %1209 = vmatprep.subr.mxu0 %v1418_v0  ;;  %1211 = vmatprep.mubr.msk.f32.mxu0 %vm1419_vm0, %v1418_v0 }
  0x26   :  { %1210 = vmatpush3.msra.mxu0 %v1484_v7  ;;  %1214 = vmatprep.subr.mxu1 %v1418_v0 }
  0x27   :  { %1215 = vmatpush3.msra.mxu1 %v1473_v4  ;;  %1222 = vmatprep.mubr.msk.f32.mxu1 %vm1419_vm0, %v1418_v0 }
  0x28   :  { %1216 = vmatprep.subr.mxu1 %v1418_v0  ;;  %1225 = vmatprep.subr.mxu0 %v1418_v0 }
  0x29   :  { %1217 = vmatpush3.msra.mxu1 %v1475_v5 }
  0x2a   :  { %1218 = vmatprep.subr.mxu1 %v1418_v0 }
  0x2b   :  { %1219 = vmatpush3.msra.mxu1 %v1479_v6 }
  0x2c   :  { %1220 = vmatprep.subr.mxu1 %v1418_v0 }
  0x2d   :  { %1221 = vmatpush3.msra.mxu1 %v1484_v7 }
  0x2e   :  { %1236 = vmatprep.subr.mxu1 %v1418_v0 }
  0xde   :  { %v1191_v9 = vpop.f32.mrf.mxu0 }
  0xdf   :  { %v147_v10 = vadd.f32 %v1191_v9, %v1110_v8 }
  0xe0   :  { %v141_v11 = vpop.f32.mrf.mxu0 }
  0xe1   :  { %v152_v12 = vrot.slane %v147_v10, 7  ;;  %v142_v13 = vadd.f32 %v1110_v8, %v141_v11 }
  0xe3   :  { %191 = vst [vmem:[#allocation2 + $0xf] sm:$0x1] %v152_v12  ;;  %v154_v14 = vsel %vm153_vm3, %v152_v12, %v142_v13  ;;  %v158_v15 = vsel %vm157_vm4, %v152_v12, %v142_v13  ;;  %v163_v16 = vsel %vm162_vm5, %v152_v12, %v142_v13  ;;  %v168_v17 = vsel %vm167_vm6, %v152_v12, %v142_v13 }
  0xe4   :  { %190 = vst [vmem:[#allocation2 + $0x7] sm:$0x80] %v142_v13  ;;  %v173_v18 = vsel %vm172_vm7, %v152_v12, %v142_v13  ;;  %v178_v19 = vsel %vm177_vm8, %v152_v12, %v142_v13  ;;  %v183_v20 = vsel %vm182_vm9, %v152_v12, %v142_v13  ;;  %156 = vst [vmem:[#allocation2] sm:$0x3] %v154_v14  ;;  %v263_v21 = vpop.f32.mrf.mxu1 }
  0xe5   :  { %161 = vst [vmem:[#allocation2 + $0x1] sm:$0x6] %v158_v15  ;;  %166 = vst [vmem:[#allocation2 + $0x2] sm:$0xc] %v163_v16 }
  0xe6   :  { %171 = vst [vmem:[#allocation2 + $0x3] sm:$0x18] %v168_v17  ;;  %176 = vst [vmem:[#allocation2 + $0x4] sm:$0x30] %v173_v18  ;;  %v1202_v22 = vpop.f32.mrf.mxu1 }
  0xe7   :  { %181 = vst [vmem:[#allocation2 + $0x5] sm:$0x60] %v178_v19  ;;  %186 = vst [vmem:[#allocation2 + $0x6] sm:$0xc0] %v183_v20 }
  0xeb   :  { %v192_v23 = vld [vmem:[#allocation2] sm:$0x3] }
  0xec   :  { %v267_v24 = vadd.f32 %v263_v21, %v192_v23  ;;  %v293_v40 = vld [vmem:[#allocation2 + $0x2] sm:$0x3]  ;;  %v395_v59 = vld [vmem:[#allocation2 + $0x4] sm:$0x3] }
  0xed   :  { %v497_v19 = vld [vmem:[#allocation2 + $0x6] sm:$0x3] }
  0xee   :  { %v1114_v25 = vmul.f32 -1.442695, %v267_v24 }
  0xf0   :  { %1300 = vpow2.f32 %v1114_v25 }
  0xfd   :  { %v1301_v26 = vpop.eup %1300 }
  0xfe   :  { %v271_v27 = vadd.f32 1.0, %v1301_v26 }
 0x100   :  { %1302 = vrcp.f32 %v271_v27 }
 0x10d   :  { %v1303_v28 = vpop.eup %1302 }
 0x10e   :  { %v274_v29 = vmul.f32 2.0, %v1303_v28  ;;  %v276_v33 = vmul.f32 0.0, %v1303_v28 }
 0x110   :  { %v1115_v30 = vadd.f32 -1.0, %v274_v29 }
 0x112   :  { %278 = vrot.lane.b32.xlu0 %v1115_v30, %s1420_s3 }
 0x184   :  { %v279_v31 = vpop.permute.xlu0 %278 }
 0x185   :  { %v281_v32 = vmul.f32 %v1303_v28, %v279_v31 }
 0x187   :  { %283 = vrot.lane.b32.xlu0 %v281_v32, %s1421_s12 }
 0x1f9   :  { %v284_v34 = vpop.permute.xlu0 %283 }
 0x1fa   :  { %v286_v35 = vadd.f32 %v284_v34, %v276_v33 }
 0x1fc   :  { %1304 = vtanh.f32 %v286_v35 }
 0x209   :  { %v1305_v36 = vpop.eup %1304 }
 0x20a   :  { %289 = vrot.lane.b32.xlu1 %v1305_v36, %s1420_s3 }
 0x27c   :  { %v290_v37 = vpop.permute.xlu1 %289 }
 0x27d   :  { %v292_v38 = vmul.f32 %v1303_v28, %v290_v37 }
 0x27f   :  { %295 = vrot.lane.b32.xlu1 %v292_v38, %s1421_s12  ;;  %v599_v38 = vld [vmem:[#allocation2 + $0x8] sm:$0x3] }
 0x2f1   :  { %v296_v39 = vpop.permute.xlu1 %295 }
 0x2f2   :  { %1212 = vmatmul.mubr.msk.f32.vlgmr.msra.gmra.mxu0 %vm193_vm10, %v296_v39 }
 0x2f3   :  { %1226 = vmatpush3.msra.mxu0 %v1473_v4  ;;  %1233 = vmatprep.mubr.msk.f32.mxu0 %vm1419_vm0, %v1418_v0 }
 0x2f4   :  { %1227 = vmatprep.subr.mxu0 %v1418_v0 }
 0x2f5   :  { %1228 = vmatpush3.msra.mxu0 %v1475_v5 }
 0x2f6   :  { %1229 = vmatprep.subr.mxu0 %v1418_v0 }
 0x2f7   :  { %1230 = vmatpush3.msra.mxu0 %v1479_v6 }
 0x2f8   :  { %1231 = vmatprep.subr.mxu0 %v1418_v0 }
 0x2f9   :  { %1232 = vmatpush3.msra.mxu0 %v1484_v7 }
 0x2fa   :  { %1247 = vmatprep.subr.mxu0 %v1418_v0 }
 0x3b2   :  { %v365_v41 = vpop.f32.mrf.mxu0 }
 0x3b3   :  { %v369_v42 = vadd.f32 %v365_v41, %v293_v40 }
 0x3b4   :  { %v1213_v43 = vpop.f32.mrf.mxu0 }
 0x3b5   :  { %v1117_v44 = vmul.f32 -1.442695, %v369_v42 }
 0x3b7   :  { %1306 = vpow2.f32 %v1117_v44 }
 0x3c4   :  { %v1307_v45 = vpop.eup %1306 }
 0x3c5   :  { %v373_v46 = vadd.f32 1.0, %v1307_v45 }
 0x3c7   :  { %1308 = vrcp.f32 %v373_v46 }
 0x3d4   :  { %v1309_v47 = vpop.eup %1308 }
 0x3d5   :  { %v376_v48 = vmul.f32 2.0, %v1309_v47  ;;  %v378_v52 = vmul.f32 %v1309_v47, %v286_v35 }
 0x3d7   :  { %v1118_v49 = vadd.f32 -1.0, %v376_v48 }
 0x3d9   :  { %380 = vrot.lane.b32.xlu0 %v1118_v49, %s1420_s3 }
 0x44b   :  { %v381_v50 = vpop.permute.xlu0 %380 }
 0x44c   :  { %v383_v51 = vmul.f32 %v1309_v47, %v381_v50 }
 0x44e   :  { %385 = vrot.lane.b32.xlu1 %v383_v51, %s1421_s12 }
 0x4c0   :  { %v386_v53 = vpop.permute.xlu1 %385 }
 0x4c1   :  { %v388_v54 = vadd.f32 %v386_v53, %v378_v52 }
 0x4c3   :  { %1310 = vtanh.f32 %v388_v54 }
 0x4d0   :  { %v1311_v55 = vpop.eup %1310 }
 0x4d1   :  { %391 = vrot.lane.b32.xlu0 %v1311_v55, %s1420_s3 }
 0x543   :  { %v392_v56 = vpop.permute.xlu0 %391 }
 0x544   :  { %v394_v57 = vmul.f32 %v1309_v47, %v392_v56 }
 0x546   :  { %397 = vrot.lane.b32.xlu1 %v394_v57, %s1421_s12  ;;  %v701_v57 = vld [vmem:[#allocation2 + $0xa] sm:$0x3] }
 0x5b8   :  { %v398_v58 = vpop.permute.xlu1 %397 }
 0x5b9   :  { %1223 = vmatmul.mubr.msk.f32.vlgmr.msra.gmra.mxu1 %vm193_vm10, %v398_v58 }
 0x5ba   :  { %1237 = vmatpush3.msra.mxu1 %v1473_v4  ;;  %1244 = vmatprep.mubr.msk.f32.mxu1 %vm1419_vm0, %v1418_v0 }
 0x5bb   :  { %1238 = vmatprep.subr.mxu1 %v1418_v0 }
 0x5bc   :  { %1239 = vmatpush3.msra.mxu1 %v1475_v5 }
 0x5bd   :  { %1240 = vmatprep.subr.mxu1 %v1418_v0 }
 0x5be   :  { %1241 = vmatpush3.msra.mxu1 %v1479_v6 }
 0x5bf   :  { %1242 = vmatprep.subr.mxu1 %v1418_v0 }
 0x5c0   :  { %1243 = vmatpush3.msra.mxu1 %v1484_v7 }
 0x5c1   :  { %1258 = vmatprep.subr.mxu1 %v1418_v0 }
 0x679   :  { %v467_v60 = vpop.f32.mrf.mxu1 }
 0x67a   :  { %v471_v61 = vadd.f32 %v467_v60, %v395_v59 }
 0x67b   :  { %v1224_v62 = vpop.f32.mrf.mxu1 }
 0x67c   :  { %v1120_v63 = vmul.f32 -1.442695, %v471_v61 }
 0x67e   :  { %1312 = vpow2.f32 %v1120_v63 }
 0x68b   :  { %v1313_v1 = vpop.eup %1312 }
 0x68c   :  { %v475_v2 = vadd.f32 1.0, %v1313_v1 }
 0x68e   :  { %1314 = vrcp.f32 %v475_v2 }
 0x69b   :  { %v1315_v3 = vpop.eup %1314 }
 0x69c   :  { %v478_v8 = vmul.f32 2.0, %v1315_v3  ;;  %v480_v12 = vmul.f32 %v1315_v3, %v388_v54 }
 0x69e   :  { %v1121_v9 = vadd.f32 -1.0, %v478_v8 }
 0x6a0   :  { %482 = vrot.lane.b32.xlu0 %v1121_v9, %s1420_s3 }
 0x712   :  { %v483_v10 = vpop.permute.xlu0 %482 }
 0x713   :  { %v485_v11 = vmul.f32 %v1315_v3, %v483_v10 }
 0x715   :  { %487 = vrot.lane.b32.xlu1 %v485_v11, %s1421_s12 }
 0x787   :  { %v488_v13 = vpop.permute.xlu1 %487 }
 0x788   :  { %v490_v14 = vadd.f32 %v488_v13, %v480_v12  ;;  %v803_v13 = vld [vmem:[#allocation2 + $0xc] sm:$0x3] }
 0x78a   :  { %1316 = vtanh.f32 %v490_v14 }
 0x797   :  { %v1317_v15 = vpop.eup %1316 }
 0x798   :  { %493 = vrot.lane.b32.xlu0 %v1317_v15, %s1420_s3 }
 0x80a   :  { %v494_v16 = vpop.permute.xlu0 %493 }
 0x80b   :  { %v496_v17 = vmul.f32 %v1315_v3, %v494_v16 }
 0x80d   :  { %499 = vrot.lane.b32.xlu1 %v496_v17, %s1421_s12 }
 0x87f   :  { %v500_v18 = vpop.permute.xlu1 %499 }
 0x880   :  { %1234 = vmatmul.mubr.msk.f32.vlgmr.msra.gmra.mxu0 %vm193_vm10, %v500_v18 }
 0x881   :  { %1248 = vmatpush3.msra.mxu0 %v1473_v4  ;;  %1255 = vmatprep.mubr.msk.f32.mxu0 %vm1419_vm0, %v1418_v0 }
 0x882   :  { %1249 = vmatprep.subr.mxu0 %v1418_v0 }
 0x883   :  { %1250 = vmatpush3.msra.mxu0 %v1475_v5 }
 0x884   :  { %1251 = vmatprep.subr.mxu0 %v1418_v0 }
 0x885   :  { %1252 = vmatpush3.msra.mxu0 %v1479_v6 }
 0x886   :  { %1253 = vmatprep.subr.mxu0 %v1418_v0 }
 0x887   :  { %1254 = vmatpush3.msra.mxu0 %v1484_v7 }
 0x888   :  { %1269 = vmatprep.subr.mxu0 %v1418_v0 }
 0x940   :  { %v569_v20 = vpop.f32.mrf.mxu0 }
 0x941   :  { %v573_v21 = vadd.f32 %v569_v20, %v497_v19 }
 0x942   :  { %v1235_v22 = vpop.f32.mrf.mxu0 }
 0x943   :  { %v1123_v23 = vmul.f32 -1.442695, %v573_v21 }
 0x945   :  { %1318 = vpow2.f32 %v1123_v23 }
 0x952   :  { %v1319_v24 = vpop.eup %1318 }
 0x953   :  { %v577_v25 = vadd.f32 1.0, %v1319_v24 }
 0x955   :  { %1320 = vrcp.f32 %v577_v25 }
 0x962   :  { %v1321_v26 = vpop.eup %1320 }
 0x963   :  { %v580_v27 = vmul.f32 2.0, %v1321_v26  ;;  %v582_v31 = vmul.f32 %v1321_v26, %v490_v14 }
 0x965   :  { %v1124_v28 = vadd.f32 -1.0, %v580_v27 }
 0x967   :  { %584 = vrot.lane.b32.xlu0 %v1124_v28, %s1420_s3 }
 0x9d9   :  { %v585_v29 = vpop.permute.xlu0 %584 }
 0x9da   :  { %v587_v30 = vmul.f32 %v1321_v26, %v585_v29 }
 0x9dc   :  { %589 = vrot.lane.b32.xlu1 %v587_v30, %s1421_s12 }
 0xa4e   :  { %v590_v32 = vpop.permute.xlu1 %589 }
 0xa4f   :  { %v592_v33 = vadd.f32 %v590_v32, %v582_v31  ;;  %v905_v32 = vld [vmem:[#allocation2 + $0xe] sm:$0x3] }
 0xa51   :  { %1322 = vtanh.f32 %v592_v33 }
 0xa5e   :  { %v1323_v34 = vpop.eup %1322 }
 0xa5f   :  { %595 = vrot.lane.b32.xlu0 %v1323_v34, %s1420_s3 }
 0xad1   :  { %v596_v35 = vpop.permute.xlu0 %595 }
 0xad2   :  { %v598_v36 = vmul.f32 %v1321_v26, %v596_v35 }
 0xad4   :  { %601 = vrot.lane.b32.xlu1 %v598_v36, %s1421_s12 }
 0xb46   :  { %v602_v37 = vpop.permute.xlu1 %601 }
 0xb47   :  { %1245 = vmatmul.mubr.msk.f32.vlgmr.msra.gmra.mxu1 %vm193_vm10, %v602_v37 }
 0xb48   :  { %1259 = vmatpush3.msra.mxu1 %v1473_v4  ;;  %1266 = vmatprep.mubr.msk.f32.mxu1 %vm1419_vm0, %v1418_v0 }
 0xb49   :  { %1260 = vmatprep.subr.mxu1 %v1418_v0 }
 0xb4a   :  { %1261 = vmatpush3.msra.mxu1 %v1475_v5 }
 0xb4b   :  { %1262 = vmatprep.subr.mxu1 %v1418_v0 }
 0xb4c   :  { %1263 = vmatpush3.msra.mxu1 %v1479_v6 }
 0xb4d   :  { %1264 = vmatprep.subr.mxu1 %v1418_v0 }
 0xb4e   :  { %1265 = vmatpush3.msra.mxu1 %v1484_v7 }
 0xb4f   :  { %1280 = vmatprep.subr.mxu1 %v1418_v0 }
 0xc07   :  { %v671_v39 = vpop.f32.mrf.mxu1 }
 0xc08   :  { %v675_v40 = vadd.f32 %v671_v39, %v599_v38 }
 0xc09   :  { %v1246_v41 = vpop.f32.mrf.mxu1 }
 0xc0a   :  { %v1126_v42 = vmul.f32 -1.442695, %v675_v40 }
 0xc0c   :  { %1324 = vpow2.f32 %v1126_v42 }
 0xc19   :  { %v1325_v43 = vpop.eup %1324 }
 0xc1a   :  { %v679_v44 = vadd.f32 1.0, %v1325_v43 }
 0xc1c   :  { %1326 = vrcp.f32 %v679_v44 }
 0xc29   :  { %v1327_v45 = vpop.eup %1326 }
 0xc2a   :  { %v682_v46 = vmul.f32 2.0, %v1327_v45  ;;  %v684_v50 = vmul.f32 %v1327_v45, %v592_v33 }
 0xc2c   :  { %v1127_v47 = vadd.f32 -1.0, %v682_v46 }
 0xc2e   :  { %686 = vrot.lane.b32.xlu0 %v1127_v47, %s1420_s3  ;;  %v1010_v47 = vld [vmem:[%s1630_s4 + $0x18] sm:$0xff] }
 0xca0   :  { %v687_v48 = vpop.permute.xlu0 %686 }
 0xca1   :  { %v689_v49 = vmul.f32 %v1327_v45, %v687_v48  ;;  %v1009_v48 = vld [vmem:[%s1630_s4 + $0x10] sm:$0xff] }
 0xca3   :  { %691 = vrot.lane.b32.xlu1 %v689_v49, %s1421_s12  ;;  %v1008_v49 = vld [vmem:[%s1630_s4 + $0x8] sm:$0xff] }
 0xd15   :  { %v692_v51 = vpop.permute.xlu1 %691 }
 0xd16   :  { %v694_v52 = vadd.f32 %v692_v51, %v684_v50  ;;  %v1007_v50 = vld [vmem:[%s1630_s4] sm:$0xff]  ;;  %s1100_s4 = sshll.u32 %s1422_s23, 4  ;;  %s1101_s4 = int_to_ptr.vmem [resolvable:$true] %s1100_s4 }
 0xd17   :  { %s1388_s24 = scalar_lea.vmem %s1101_s4, 32  ;;  %p1393_p11 = scmp.lt.s32.totalorder %s1101_s4, %s1101_s4 }
 0xd18   :  { %1328 = vtanh.f32 %v694_v52  ;;  %p1389_p10 = scmp.ne.s32.totalorder %s1101_s4, %s1388_s24  ;;  %p1394_p12 = scmp.lt.s32.totalorder %s1388_s24, %s1388_s24 }
 0xd1a   :  { %p1395_p13 = por %p1394_p12, %p1393_p11 }
 0xd1c   :  { %p1396_p0 = pnand %p1395_p13, %p1389_p10 }
 0xd25   :  { %v1329_v53 = vpop.eup %1328 }
 0xd26   :  { %697 = vrot.lane.b32.xlu0 %v1329_v53, %s1420_s3 }
 0xd98   :  { %v698_v54 = vpop.permute.xlu0 %697 }
 0xd99   :  { %v700_v55 = vmul.f32 %v1327_v45, %v698_v54 }
 0xd9b   :  { %703 = vrot.lane.b32.xlu1 %v700_v55, %s1421_s12  ;;  %v1137_v55 = vld [vmem:[%s1631_s5] ss:$0 sm:$0xff] }
 0xe0d   :  { %v704_v56 = vpop.permute.xlu1 %703 }
 0xe0e   :  { %1256 = vmatmul.mubr.msk.f32.vlgmr.msra.gmra.mxu0 %vm193_vm10, %v704_v56 }
 0xe0f   :  { %1270 = vmatpush3.msra.mxu0 %v1473_v4  ;;  %1277 = vmatprep.mubr.msk.f32.mxu0 %vm1419_vm0, %v1418_v0 }
 0xe10   :  { %1271 = vmatprep.subr.mxu0 %v1418_v0 }
 0xe11   :  { %1272 = vmatpush3.msra.mxu0 %v1475_v5 }
 0xe12   :  { %1273 = vmatprep.subr.mxu0 %v1418_v0 }
 0xe13   :  { %1274 = vmatpush3.msra.mxu0 %v1479_v6 }
 0xe14   :  { %1275 = vmatprep.subr.mxu0 %v1418_v0 }
 0xe15   :  { %1276 = vmatpush3.msra.mxu0 %v1484_v7 }
 0xece   :  { %v773_v58 = vpop.f32.mrf.mxu0 }
 0xecf   :  { %v777_v59 = vadd.f32 %v773_v58, %v701_v57 }
 0xed0   :  { %v1257_v60 = vpop.f32.mrf.mxu0 }
 0xed1   :  { %v1129_v4 = vmul.f32 -1.442695, %v777_v59 }
 0xed3   :  { %1330 = vpow2.f32 %v1129_v4 }
 0xee0   :  { %v1331_v61 = vpop.eup %1330 }
 0xee1   :  { %v781_v62 = vadd.f32 1.0, %v1331_v61 }
 0xee3   :  { %1332 = vrcp.f32 %v781_v62 }
 0xef0   :  { %v1333_v63 = vpop.eup %1332 }
 0xef1   :  { %v784_v1 = vmul.f32 2.0, %v1333_v63  ;;  %v786_v3 = vmul.f32 %v1333_v63, %v694_v52 }
 0xef3   :  { %v1130_v5 = vadd.f32 -1.0, %v784_v1 }
 0xef5   :  { %788 = vrot.lane.b32.xlu0 %v1130_v5, %s1420_s3 }
 0xf67   :  { %v789_v2 = vpop.permute.xlu0 %788 }
 0xf68   :  { %v791_v6 = vmul.f32 %v1333_v63, %v789_v2 }
 0xf6a   :  { %793 = vrot.lane.b32.xlu1 %v791_v6, %s1421_s12 }
 0xfdc   :  { %v794_v7 = vpop.permute.xlu1 %793 }
 0xfdd   :  { %v796_v8 = vadd.f32 %v794_v7, %v786_v3 }
 0xfdf   :  { %1334 = vtanh.f32 %v796_v8 }
 0xfec   :  { %v1335_v9 = vpop.eup %1334 }
 0xfed   :  { %799 = vrot.lane.b32.xlu0 %v1335_v9, %s1420_s3 }
0x105f   :  { %v800_v10 = vpop.permute.xlu0 %799 }
0x1060   :  { %v802_v11 = vmul.f32 %v1333_v63, %v800_v10 }
0x1062   :  { %805 = vrot.lane.b32.xlu1 %v802_v11, %s1421_s12 }
0x10d4   :  { %v806_v12 = vpop.permute.xlu1 %805 }
0x10d5   :  { %1267 = vmatmul.mubr.msk.f32.vlgmr.msra.gmra.mxu1 %vm193_vm10, %v806_v12 }
0x10d6   :  { %1288 = vmatprep.mubr.msk.f32.mxu1 %vm1419_vm0, %v1418_v0  ;;  %1281 = vmatpush3.msra.mxu1 %v1010_v47 }
0x10d7   :  { %1282 = vmatprep.subr.mxu1 %v1418_v0 }
0x10d8   :  { %1283 = vmatpush3.msra.mxu1 %v1009_v48 }
0x10d9   :  { %1284 = vmatprep.subr.mxu1 %v1418_v0 }
0x10da   :  { %1285 = vmatpush3.msra.mxu1 %v1008_v49 }
0x10db   :  { %1286 = vmatprep.subr.mxu1 %v1418_v0 }
0x10dc   :  { %1287 = vmatpush3.msra.mxu1 %v1007_v50 }
0x1195   :  { %v875_v14 = vpop.f32.mrf.mxu1 }
0x1196   :  { %v879_v15 = vadd.f32 %v875_v14, %v803_v13 }
0x1197   :  { %v1268_v16 = vpop.f32.mrf.mxu1 }
0x1198   :  { %v1132_v17 = vmul.f32 -1.442695, %v879_v15 }
0x119a   :  { %1336 = vpow2.f32 %v1132_v17 }
0x11a7   :  { %v1337_v18 = vpop.eup %1336 }
0x11a8   :  { %v883_v19 = vadd.f32 1.0, %v1337_v18 }
0x11aa   :  { %1338 = vrcp.f32 %v883_v19 }
0x11b7   :  { %v1339_v20 = vpop.eup %1338 }
0x11b8   :  { %v886_v21 = vmul.f32 2.0, %v1339_v20  ;;  %v888_v25 = vmul.f32 %v1339_v20, %v796_v8 }
0x11ba   :  { %v1133_v22 = vadd.f32 -1.0, %v886_v21 }
0x11bc   :  { %890 = vrot.lane.b32.xlu0 %v1133_v22, %s1420_s3 }
0x122e   :  { %v891_v23 = vpop.permute.xlu0 %890 }
0x122f   :  { %v893_v24 = vmul.f32 %v1339_v20, %v891_v23 }
0x1231   :  { %895 = vrot.lane.b32.xlu1 %v893_v24, %s1421_s12 }
0x12a3   :  { %v896_v26 = vpop.permute.xlu1 %895 }
0x12a4   :  { %v898_v27 = vadd.f32 %v896_v26, %v888_v25 }
0x12a6   :  { %1340 = vtanh.f32 %v898_v27 }
0x12b3   :  { %v1341_v28 = vpop.eup %1340 }
0x12b4   :  { %901 = vrot.lane.b32.xlu0 %v1341_v28, %s1420_s3 }
0x1326   :  { %v902_v29 = vpop.permute.xlu0 %901 }
0x1327   :  { %v904_v30 = vmul.f32 %v1339_v20, %v902_v29 }
0x1329   :  { %907 = vrot.lane.b32.xlu1 %v904_v30, %s1421_s12 }
0x139b   :  { %v908_v31 = vpop.permute.xlu1 %907 }
0x139c   :  { %1278 = vmatmul.mubr.msk.f32.vlgmr.msra.gmra.mxu0 %vm193_vm10, %v908_v31 }
0x145c   :  { %v977_v33 = vpop.f32.mrf.mxu0 }
0x145d   :  { %v981_v34 = vadd.f32 %v977_v33, %v905_v32 }
0x145e   :  { %v1279_v35 = vpop.f32.mrf.mxu0 }
0x145f   :  { %v1135_v36 = vmul.f32 -1.442695, %v981_v34 }
0x1461   :  { %1342 = vpow2.f32 %v1135_v36 }
0x146e   :  { %v1343_v37 = vpop.eup %1342 }
0x146f   :  { %v985_v38 = vadd.f32 1.0, %v1343_v37 }
0x1471   :  { %1344 = vrcp.f32 %v985_v38 }
0x147e   :  { %v1345_v39 = vpop.eup %1344 }
0x147f   :  { %v988_v40 = vmul.f32 2.0, %v1345_v39  ;;  %v990_v44 = vmul.f32 %v1345_v39, %v898_v27 }
0x1481   :  { %v1136_v41 = vadd.f32 -1.0, %v988_v40 }
0x1483   :  { %992 = vrot.lane.b32.xlu0 %v1136_v41, %s1420_s3 }
0x14f5   :  { %v993_v42 = vpop.permute.xlu0 %992 }
0x14f6   :  { %v995_v43 = vmul.f32 %v1345_v39, %v993_v42 }
0x14f8   :  { %997 = vrot.lane.b32.xlu1 %v995_v43, %s1421_s12 }
0x156a   :  { %v998_v45 = vpop.permute.xlu1 %997 }
0x156b   :  { %v1000_v46 = vadd.f32 %v998_v45, %v990_v44 }
0x156d   :  { %1346 = vtanh.f32 %v1000_v46 }
0x157a   :  { %v1347_v51 = vpop.eup %1346 }
0x157b   :  { %1003 = vrot.lane.b32.xlu0 %v1347_v51, %s1420_s3 }
0x15ed   :  { %v1004_v52 = vpop.permute.xlu0 %1003 }
0x15ee   :  { %v1006_v53 = vmul.f32 %v1345_v39, %v1004_v52 }
0x15f0   :  { %1019 = vrot.lane.b32.xlu1 %v1006_v53, %s1421_s12 }
0x1662   :  { %v1020_v54 = vpop.permute.xlu1 %1019 }
0x1663   :  { %1289 = vmatmul.mubr.msk.f32.vlgmr.msra.gmra.mxu1 %vm193_vm10, %v1020_v54 }
0x1723   :  { %v1089_v56 = vpop.f32.mrf.mxu1 }
0x1724   :  { %v1090_v57 = vadd.f32 %v1137_v55, %v1089_v56 }
0x1725   :  { %v1290_v0 = vpop.f32.mrf.mxu1 }
0x1726   :  { %1093 = vst [vmem:[#allocation8] sm:$0x3] %v1090_v57 }
0x1727   :  { %1399 = shalt.err (!%p1396_p0)
}
0x1728   :  { %1103 = dma.vmem_to_hbm [thread:$0]  %s1101_s4, 32, %s1632_s6, [#allocation5]  }
0x1729   :  { %1412 = dma.done.wait [#allocation5], 32  }
0x172a   :  { %1413 = vsyncadd [#allocation5], 4294967264 }
0x172b   :  { %1107 = vsyncpa [#allocation4], 1 }
0x172c   :  { %1108 = vsyncpa [#allocation7], 1 }
0x172d   :  { %1109 = vsyncpa [#allocation5], 1 }

</bundles_post_ra>
